<compile_context>
chip_gen: v7x
topology: tpu7x:2x2x1
jax: 0.10.0
libtpu: 0.0.40
codegen_flags: <defaults>
</compile_context>

<pallas_src>
import jax
import jax.numpy as jnp
from jax.experimental import pallas as pl
from jax.experimental.pallas import tpu as pltpu

# ---- hyperparameters (Proxy_NCA module: nb_classes, sz_embed, scale=32) ----
NB_CLASSES = 8
SZ_EMBED = 32
SOFTMAX_SCALE = 32.0
C_PAD = 128            # lane-dense padded class axis
EPS_SQ = 1e-24         # F.normalize eps=1e-12, applied to the squared norm
NEG_BIG = -1e30        # finite "-inf" for padded classes (avoids inf * 0 = NaN)


def proxy_nca_kernel(emb_ref, prox_ref, lab_ref, out_ref):
    emb = emb_ref[...]     # (B, D)       float32
    prox = prox_ref[...]   # (C_PAD, D)   float32, rows >= NB_CLASSES are zero
    lab = lab_ref[...]     # (B, 1)       int32

    b = emb.shape[0]

    # L2-normalize embeddings along D (F.normalize: x / max(||x||, eps)).
    emb_n = emb * jax.lax.rsqrt(
        jnp.maximum(jnp.sum(emb * emb, axis=1, keepdims=True), EPS_SQ))

    # Proxy L2-normalization and the 2*softmax_scale factor folded into one per-row scale of
    # the (C_PAD, D) rhs. Zero (padded) rows stay exactly zero, so the huge rsqrt is harmless.
    # By softmax shift-invariance the logits can be 2*scale*cos (the -2*scale constant of the
    # squared distance cancels in lse - tgt), so nothing is applied after the matmul.
    row_scale = jax.lax.rsqrt(
        jnp.maximum(jnp.sum(prox * prox, axis=1, keepdims=True), EPS_SQ)
    ) * (2.0 * SOFTMAX_SCALE)                                            # (C_PAD, 1)
    prox_s = prox * row_scale                                            # (C_PAD, D)

    # Logits straight off the MXU: NT contraction (no transpose of the rhs in the wrapper).
    mat = jax.lax.dot_general(
        emb_n, prox_s,
        dimension_numbers=(((1,), (1,)), ((), ())),
        preferred_element_type=jnp.float32,
        precision=jax.lax.Precision.HIGHEST,
    )                                                                    # (B, C_PAD)

    # Mask padded classes; gather the true-class logit with a select (no one-hot multiply).
    cls = jax.lax.broadcasted_iota(jnp.int32, (b, C_PAD), 1)
    mat = jnp.where(cls < NB_CLASSES, mat, NEG_BIG)

    # Cross-entropy of the true proxy: lse(mat) - mat[label]  (== -log softmax prob).
    m = jnp.max(mat, axis=1, keepdims=True)                              # (B, 1)
    lse = m + jnp.log(jnp.sum(jnp.exp(mat - m), axis=1, keepdims=True))  # (B, 1)
    tgt = jnp.sum(jnp.where(cls == lab, mat, 0.0), axis=1, keepdims=True)

    # Mean over the batch -> scalar into SMEM (no padded VMEM output tile).
    out_ref[0, 0] = jnp.sum(lse - tgt) * (1.0 / b)


def proxy_nca_loss(embeddings, labels, proxies):
    """embeddings: (B, D) f32, labels: (B,) int32, proxies: (C, D) f32 -> scalar f32 loss."""
    b, _ = embeddings.shape
    c = proxies.shape[0]

    # Lane-dense padding of the class axis to 128 (zero rows, masked in-kernel). No transpose.
    prox_pad = jnp.pad(proxies, ((0, C_PAD - c), (0, 0)))        # (C_PAD, D)
    lab2d = labels.astype(jnp.int32).reshape(b, 1)               # (B, 1)

    out = pl.pallas_call(
        proxy_nca_kernel,
        out_shape=jax.ShapeDtypeStruct((1, 1), jnp.float32),
        in_specs=[
            pl.BlockSpec(memory_space=pltpu.MemorySpace.VMEM),   # embeddings
            pl.BlockSpec(memory_space=pltpu.MemorySpace.VMEM),   # padded proxies (C_PAD, D)
            pl.BlockSpec(memory_space=pltpu.MemorySpace.VMEM),   # labels (B, 1) int32
        ],
        out_specs=pl.BlockSpec(memory_space=pltpu.MemorySpace.SMEM),
    )(embeddings, prox_pad, lab2d)
    return out[0, 0]


def _reference_loss(embeddings, labels, proxies):
    """Pure-JAX reference of pml ProxyNCALoss (softmax_scale=32, mean reduction)."""
    e = embeddings / jnp.maximum(
        jnp.linalg.norm(embeddings, axis=1, keepdims=True), 1e-12)
    p = proxies / jnp.maximum(
        jnp.linalg.norm(proxies, axis=1, keepdims=True), 1e-12)
    d2 = jnp.sum((e[:, None, :] - p[None, :, :]) ** 2, axis=-1)
    mat = -SOFTMAX_SCALE * d2
    lse = jax.scipy.special.logsumexp(mat, axis=1)
    tgt = mat[jnp.arange(embeddings.shape[0]), labels]
    return jnp.mean(lse - tgt)


if __name__ == "__main__":
    key = jax.random.PRNGKey(0)
    k_emb, k_prox, k_lab = jax.random.split(key, 3)

    B = 16
    embeddings = jax.random.normal(k_emb, (B, SZ_EMBED), dtype=jnp.float32)
    labels = jax.random.randint(k_lab, (B,), 0, NB_CLASSES, dtype=jnp.int32)
    # ProxyNCALoss parameter: one proxy per class, shape (num_classes, embedding_size),
    # torch.randn init -> deterministic synthetic stand-in here.
    proxies = jax.random.normal(k_prox, (NB_CLASSES, SZ_EMBED), dtype=jnp.float32)

    loss = proxy_nca_loss(embeddings, labels, proxies)
    jax.block_until_ready(loss)

    ref = _reference_loss(embeddings, labels, proxies)
    assert loss.shape == () and jnp.isfinite(loss)
    assert jnp.allclose(loss, ref, rtol=1e-3, atol=1e-3), (loss, ref)
    print("KERNEL_OK")
</pallas_src>

<mosaic_0001>
module attributes {stable_mosaic.version = 11 : i64} {
  func.func @proxy_nca_kernel(%arg0: memref<16x32xf32, #tpu.memory_space<vmem>>, %arg1: memref<128x32xf32, #tpu.memory_space<vmem>>, %arg2: memref<16x1xi32, #tpu.memory_space<vmem>>, %arg3: memref<1x1xf32, #tpu.memory_space<smem>>) attributes {dimension_semantics = [], scalar_prefetch = 0 : i64, scratch_operands = 0 : i64, tpu.core_type = #tpu.core_type<tc>} {
    %c0 = arith.constant 0 : index
    %c0_0 = arith.constant 0 : index
    %0 = vector.load %arg0[%c0, %c0_0] : memref<16x32xf32, #tpu.memory_space<vmem>>, vector<16x32xf32>
    %c0_1 = arith.constant 0 : index
    %c0_2 = arith.constant 0 : index
    %1 = vector.load %arg1[%c0_1, %c0_2] : memref<128x32xf32, #tpu.memory_space<vmem>>, vector<128x32xf32>
    %c0_3 = arith.constant 0 : index
    %c0_4 = arith.constant 0 : index
    %2 = vector.load %arg2[%c0_3, %c0_4] : memref<16x1xi32, #tpu.memory_space<vmem>>, vector<16x1xi32>
    %3 = arith.mulf %0, %0 : vector<16x32xf32>
    %cst = arith.constant dense<0.000000e+00> : vector<16xf32>
    %4 = vector.multi_reduction <add>, %3, %cst [1] : vector<16x32xf32> to vector<16xf32>
    %5 = vector.shape_cast %4 : vector<16xf32> to vector<16x1xf32>
    %cst_5 = arith.constant 1.000000e-24 : f32
    %6 = vector.broadcast %cst_5 : f32 to vector<16x1xf32>
    %7 = arith.maximumf %5, %6 : vector<16x1xf32>
    %8 = math.rsqrt %7 : vector<16x1xf32>
    %9 = vector.broadcast %8 : vector<16x1xf32> to vector<16x32xf32>
    %10 = arith.mulf %0, %9 : vector<16x32xf32>
    %11 = arith.mulf %1, %1 : vector<128x32xf32>
    %cst_6 = arith.constant dense<0.000000e+00> : vector<128xf32>
    %12 = vector.multi_reduction <add>, %11, %cst_6 [1] : vector<128x32xf32> to vector<128xf32>
    %13 = vector.shape_cast %12 : vector<128xf32> to vector<128x1xf32>
    %cst_7 = arith.constant 1.000000e-24 : f32
    %14 = vector.broadcast %cst_7 : f32 to vector<128x1xf32>
    %15 = arith.maximumf %13, %14 : vector<128x1xf32>
    %16 = math.rsqrt %15 : vector<128x1xf32>
    %cst_8 = arith.constant 6.400000e+01 : f32
    %17 = vector.broadcast %cst_8 : f32 to vector<128x1xf32>
    %18 = arith.mulf %16, %17 : vector<128x1xf32>
    %19 = vector.broadcast %18 : vector<128x1xf32> to vector<128x32xf32>
    %20 = arith.mulf %1, %19 : vector<128x32xf32>
    %cst_9 = arith.constant dense<0.000000e+00> : vector<16x128xf32>
    %21 = tpu.matmul %10, %20, %cst_9 {dimension_numbers = #tpu.dot_dimension_numbers<[1], [1], [0], [0], [0, 0, 1, 0], [], []>, precision = #tpu.contract_precision<fp32>} : vector<16x32xf32>, vector<128x32xf32>, vector<16x128xf32> -> vector<16x128xf32>
    %22 = tpu.iota {dimensions = array<i32: 1>} : vector<16x128xi32>
    %c8_i32 = arith.constant 8 : i32
    %23 = vector.broadcast %c8_i32 : i32 to vector<16x128xi32>
    %24 = arith.cmpi slt, %22, %23 : vector<16x128xi32>
    %cst_10 = arith.constant -1.000000e+30 : f32
    %25 = vector.broadcast %cst_10 : f32 to vector<16x128xf32>
    %26 = arith.select %24, %21, %25 : vector<16x128xi1>, vector<16x128xf32>
    %cst_11 = arith.constant dense<0xFF800000> : vector<16xf32>
    %27 = vector.multi_reduction <maximumf>, %26, %cst_11 [1] : vector<16x128xf32> to vector<16xf32>
    %28 = vector.shape_cast %27 : vector<16xf32> to vector<16x1xf32>
    %29 = vector.broadcast %28 : vector<16x1xf32> to vector<16x128xf32>
    %30 = arith.subf %26, %29 : vector<16x128xf32>
    %31 = math.exp %30 : vector<16x128xf32>
    %cst_12 = arith.constant dense<0.000000e+00> : vector<16xf32>
    %32 = vector.multi_reduction <add>, %31, %cst_12 [1] : vector<16x128xf32> to vector<16xf32>
    %33 = vector.shape_cast %32 : vector<16xf32> to vector<16x1xf32>
    %34 = math.log %33 : vector<16x1xf32>
    %35 = arith.addf %28, %34 : vector<16x1xf32>
    %36 = vector.broadcast %2 : vector<16x1xi32> to vector<16x128xi32>
    %37 = arith.cmpi eq, %22, %36 : vector<16x128xi32>
    %cst_13 = arith.constant 0.000000e+00 : f32
    %38 = vector.broadcast %cst_13 : f32 to vector<16x128xf32>
    %39 = arith.select %37, %26, %38 : vector<16x128xi1>, vector<16x128xf32>
    %cst_14 = arith.constant dense<0.000000e+00> : vector<16xf32>
    %40 = vector.multi_reduction <add>, %39, %cst_14 [1] : vector<16x128xf32> to vector<16xf32>
    %41 = vector.shape_cast %40 : vector<16xf32> to vector<16x1xf32>
    %42 = arith.subf %35, %41 : vector<16x1xf32>
    %43 = vector.shape_cast %42 : vector<16x1xf32> to vector<1x16x1xf32>
    %cst_15 = arith.constant dense<0.000000e+00> : vector<1xf32>
    %44 = vector.multi_reduction <add>, %43, %cst_15 [1, 2] : vector<1x16x1xf32> to vector<1xf32>
    %45 = vector.shape_cast %44 : vector<1xf32> to vector<1x1x1xf32>
    %46 = vector.extract %45[0, 0, 0] : f32 from vector<1x1x1xf32>
    %cst_16 = arith.constant 6.250000e-02 : f32
    %47 = arith.mulf %46, %cst_16 : f32
    %c0_17 = arith.constant 0 : index
    %c0_18 = arith.constant 0 : index
    %48 = memref.load %arg3[%c0_17, %c0_18] : memref<1x1xf32, #tpu.memory_space<smem>>
    memref.store %47, %arg3[%c0_17, %c0_18] : memref<1x1xf32, #tpu.memory_space<smem>>
    return
  }
}

</mosaic_0001>

<bundles_post_ra>
// kernel: tpu_custom_call.1
= control target key start
LH: loop header
LB: loop body
LE: loop exit
PB: predicated region body
PF: predicated region fallthrough
CT: control target
= control target key end

     0   :  { %vm37_vm0 = vcmask 261120   ;;  %s2045_s0 = inlined_call_operand.vmem [shape: f32[16,32], index: 0, kind: input, shape index: {}]   ;;  %s2046_s1 = inlined_call_operand.vmem [shape: f32[128,32], index: 1, kind: input, shape index: {}]   ;;  %s2047_s2 = inlined_call_operand.vmem [shape: s32[16,1], index: 2, kind: input, shape index: {}]   ;;  %s2048_s3 = inlined_call_operand.hbm [shape: f32[1,1], index: 3, kind: output, shape index: {}]  }
   0x1   :  { %v1593_v0 = vld [vmem:[%s2046_s1 + $0x10] sm:$0xff]  ;;  %v1598_v1 = vld [vmem:[%s2046_s1] sm:$0xff]  ;;  %v1603_v2 = vld [vmem:[%s2046_s1 + $0x18] sm:$0xff] }
   0x2   :  { %v52_v3 = vmul.f32 %v1593_v0, %v1593_v0  ;;  %v50_v4 = vmul.f32 %v1598_v1, %v1598_v1  ;;  %v53_v5 = vmul.f32 %v1603_v2, %v1603_v2  ;;  %v1614_v6 = vld [vmem:[%s2046_s1 + $0x8] sm:$0xff]  ;;  %v1626_v9 = vld [vmem:[%s2046_s1 + $0x20] sm:$0xff]  ;;  %v1639_v16 = vld [vmem:[%s2046_s1 + $0x38] sm:$0xff] }
   0x3   :  { %v51_v7 = vmul.f32 %v1614_v6, %v1614_v6  ;;  %v1621_v8 = vld [vmem:[%s2046_s1 + $0x28] sm:$0xff]  ;;  %v54_v15 = vmul.f32 %v1626_v9, %v1626_v9  ;;  %v1644_v17 = vld [vmem:[%s2046_s1 + $0x30] sm:$0xff] }
   0x4   :  { %v72_v10 = vsel %vm37_vm0, %v52_v3, 0.0  ;;  %v66_v11 = vsel %vm37_vm0, %v50_v4, 0.0  ;;  %v75_v12 = vsel %vm37_vm0, %v53_v5, 0.0  ;;  %v55_v14 = vmul.f32 %v1621_v8, %v1621_v8 }
   0x5   :  { %73 = vadd.xlane.f32.xlu1 %v72_v10  ;;  %67 = vadd.xlane.f32.xlu0 %v66_v11  ;;  %v69_v13 = vsel %vm37_vm0, %v51_v7, 0.0 }
   0x6   :  { %8 = vsyncpa [#allocation3], 0  ;;  %v81_v18 = vsel %vm37_vm0, %v55_v14, 0.0  ;;  %v78_v19 = vsel %vm37_vm0, %v54_v15, 0.0  ;;  %v57_v20 = vmul.f32 %v1639_v16, %v1639_v16  ;;  %v56_v21 = vmul.f32 %v1644_v17, %v1644_v17  ;;  %v1655_v22 = vld [vmem:[%s2046_s1 + $0x48] sm:$0xff]  ;;  %v1660_v23 = vld [vmem:[%s2046_s1 + $0x40] sm:$0xff] }
   0x7   :  { %v59_v26 = vmul.f32 %v1655_v22, %v1655_v22  ;;  %v58_v27 = vmul.f32 %v1660_v23, %v1660_v23  ;;  %v1671_v28 = vld [vmem:[%s2046_s1 + $0x58] sm:$0xff]  ;;  %v1676_v29 = vld [vmem:[%s2046_s1 + $0x50] sm:$0xff]  ;;  %v1687_v34 = vld [vmem:[%s2046_s1 + $0x68] sm:$0xff]  ;;  %vm957_vm4 = vcmask 7168   ;;  %s1556_s26 = scalar_lea.hbm %s2048_s3, 16 }
   0x8   :  { %v87_v24 = vsel %vm37_vm0, %v57_v20, 0.0  ;;  %v84_v25 = vsel %vm37_vm0, %v56_v21, 0.0  ;;  %v61_v32 = vmul.f32 %v1671_v28, %v1671_v28  ;;  %v60_v33 = vmul.f32 %v1676_v29, %v1676_v29  ;;  %v1692_v35 = vld [vmem:[%s2046_s1 + $0x60] sm:$0xff]  ;;  %v1703_v40 = vld [vmem:[%s2046_s1 + $0x78] sm:$0xff]  ;;  %v1708_v41 = vld [vmem:[%s2046_s1 + $0x70] sm:$0xff]  ;;  %p1557_p0 = scmp.ne.s32.totalorder %s2048_s3, %s1556_s26  ;;  %p1560_p1 = scmp.lt.u32.totalorder %s1556_s26, %s2048_s3 }
   0x9   :  { %76 = vadd.xlane.f32.xlu1 %v75_v12  ;;  %70 = vadd.xlane.f32.xlu0 %v69_v13  ;;  %v93_v30 = vsel %vm37_vm0, %v59_v26, 0.0  ;;  %v90_v31 = vsel %vm37_vm0, %v58_v27, 0.0  ;;  %v63_v38 = vmul.f32 %v1687_v34, %v1687_v34  ;;  %v62_v39 = vmul.f32 %v1692_v35, %v1692_v35  ;;  %v1719_v46 = vld [vmem:[%s2045_s0] sm:$0xff]  ;;  %v1724_v47 = vld [vmem:[%s2045_s0 + $0x8] sm:$0xff] }
   0xa   :  { %v99_v36 = vsel %vm37_vm0, %v61_v32, 0.0  ;;  %v96_v37 = vsel %vm37_vm0, %v60_v33, 0.0  ;;  %v65_v44 = vmul.f32 %v1703_v40, %v1703_v40  ;;  %v64_v45 = vmul.f32 %v1708_v41, %v1708_v41  ;;  %p1562_p2 = pnand %p1560_p1, %p1557_p0 }
   0xb   :  { %v105_v42 = vsel %vm37_vm0, %v63_v38, 0.0  ;;  %v102_v43 = vsel %vm37_vm0, %v62_v39, 0.0  ;;  %v35_v50 = vmul.f32 %v1719_v46, %v1719_v46  ;;  %v36_v51 = vmul.f32 %v1724_v47, %v1724_v47 }
   0xc   :  { %v111_v48 = vsel %vm37_vm0, %v65_v44, 0.0  ;;  %v108_v49 = vsel %vm37_vm0, %v64_v45, 0.0 }
   0xd   :  { %82 = vadd.xlane.f32.xlu1 %v81_v18  ;;  %79 = vadd.xlane.f32.xlu0 %v78_v19  ;;  %v38_v52 = vsel %vm37_vm0, %v35_v50, 0.0  ;;  %v41_v53 = vsel %vm37_vm0, %v36_v51, 0.0 }
  0x11   :  { %88 = vadd.xlane.f32.xlu1 %v87_v24  ;;  %85 = vadd.xlane.f32.xlu0 %v84_v25 }
  0x15   :  { %94 = vadd.xlane.f32.xlu1 %v93_v30  ;;  %91 = vadd.xlane.f32.xlu0 %v90_v31 }
  0x19   :  { %100 = vadd.xlane.f32.xlu1 %v99_v36  ;;  %97 = vadd.xlane.f32.xlu0 %v96_v37 }
  0x1d   :  { %106 = vadd.xlane.f32.xlu1 %v105_v42  ;;  %103 = vadd.xlane.f32.xlu0 %v102_v43 }
  0x21   :  { %112 = vadd.xlane.f32.xlu1 %v111_v48  ;;  %109 = vadd.xlane.f32.xlu0 %v108_v49 }
  0x25   :  { %39 = vadd.xlane.f32.xlu0 %v38_v52  ;;  %42 = vadd.xlane.f32.xlu1 %v41_v53 }
  0x92   :  { %v74_v54 = vpop.xlane.xlu1 %73  ;;  %v68_v55 = vpop.xlane.xlu0 %67 }
  0x93   :  { %v116_v56 = vmax.f32 %v74_v54, 1e-24  ;;  %v114_v57 = vmax.f32 %v68_v55, 1e-24 }
  0x95   :  { %1512 = vrsqrt.f32 %v116_v56 }
  0x96   :  { %1514 = vrsqrt.f32 %v114_v57  ;;  %v77_v58 = vpop.xlane.xlu1 %76  ;;  %v71_v59 = vpop.xlane.xlu0 %70 }
  0x97   :  { %v117_v60 = vmax.f32 %v77_v58, 1e-24  ;;  %v115_v61 = vmax.f32 %v71_v59, 1e-24 }
  0x99   :  { %1516 = vrsqrt.f32 %v117_v60 }
  0x9a   :  { %1518 = vrsqrt.f32 %v115_v61  ;;  %v83_v62 = vpop.xlane.xlu1 %82  ;;  %v80_v63 = vpop.xlane.xlu0 %79 }
  0x9b   :  { %v119_v3 = vmax.f32 %v83_v62, 1e-24  ;;  %v118_v4 = vmax.f32 %v80_v63, 1e-24 }
  0x9d   :  { %1520 = vrsqrt.f32 %v119_v3 }
  0x9e   :  { %1522 = vrsqrt.f32 %v118_v4  ;;  %v89_v5 = vpop.xlane.xlu1 %88  ;;  %v86_v7 = vpop.xlane.xlu0 %85 }
  0x9f   :  { %v1513_v10 = vpop.eup %1512  ;;  %v121_v11 = vmax.f32 %v89_v5, 1e-24  ;;  %v120_v12 = vmax.f32 %v86_v7, 1e-24 }
  0xa0   :  { %v1515_v13 = vpop.eup %1514  ;;  %v148_v14 = vmul.f32 64.0, %v1513_v10 }
  0xa1   :  { %v146_v15 = vmul.f32 64.0, %v1515_v13  ;;  %1524 = vrsqrt.f32 %v121_v11 }
  0xa2   :  { %v164_v18 = vmul.f32 %v148_v14, %v1593_v0  ;;  %1526 = vrsqrt.f32 %v120_v12  ;;  %v95_v19 = vpop.xlane.xlu1 %94  ;;  %v92_v20 = vpop.xlane.xlu0 %91 }
  0xa3   :  { %v1517_v21 = vpop.eup %1516  ;;  %v162_v24 = vmul.f32 %v146_v15, %v1598_v1  ;;  %v123_v27 = vmax.f32 %v95_v19, 1e-24  ;;  %v122_v32 = vmax.f32 %v92_v20, 1e-24 }
  0xa4   :  { %v1519_v25 = vpop.eup %1518  ;;  %v149_v26 = vmul.f32 64.0, %v1517_v21  ;;  %v1737_v30 = vsel %vm37_vm0, %v164_v18, 0 }
  0xa5   :  { %v147_v31 = vmul.f32 64.0, %v1519_v25  ;;  %v1740_v33 = vsel %vm37_vm0, %v162_v24, 0  ;;  %v239_v1 = vand.u32 4294901760, %v1737_v30  ;;  %1528 = vrsqrt.f32 %v123_v27 }
  0xa6   :  { %v165_v36 = vmul.f32 %v149_v26, %v1603_v2  ;;  %v101_v0 = vpop.xlane.xlu1 %100  ;;  %v98_v37 = vpop.xlane.xlu0 %97  ;;  %v233_v45 = vand.u32 4294901760, %v1740_v33  ;;  %1530 = vrsqrt.f32 %v122_v32 }
  0xa7   :  { %v1521_v38 = vpop.eup %1520  ;;  %v163_v39 = vmul.f32 %v147_v31, %v1614_v6  ;;  %v125_v51 = vmax.f32 %v101_v0, 1e-24 }
  0xa8   :  { %v1523_v42 = vpop.eup %1522  ;;  %v1746_v43 = vsel %vm37_vm0, %v165_v36, 0  ;;  %v151_v44 = vmul.f32 64.0, %v1521_v38 }
  0xa9   :  { %v1750_v48 = vsel %vm37_vm0, %v163_v39, 0  ;;  %v150_v49 = vmul.f32 64.0, %v1523_v42  ;;  %v242_v2 = vand.u32 4294901760, %v1746_v43  ;;  %1532 = vrsqrt.f32 %v125_v51 }
  0xaa   :  { %v236_v50 = vand.u32 4294901760, %v1750_v48  ;;  %v167_v6 = vmul.f32 %v151_v44, %v1621_v8  ;;  %v107_v52 = vpop.xlane.xlu1 %106  ;;  %v104_v53 = vpop.xlane.xlu0 %103  ;;  %v124_v8 = vmax.f32 %v98_v37, 1e-24 }
  0xab   :  { %v1525_v54 = vpop.eup %1524  ;;  %v166_v55 = vmul.f32 %v150_v49, %v1626_v9  ;;  %v1760_v57 = vpack.c.bf16 %v242_v2, %v239_v1  ;;  %v127_v59 = vmax.f32 %v107_v52, 1e-24  ;;  %v126_v9 = vmax.f32 %v104_v53, 1e-24 }
  0xac   :  { %v1527_v56 = vpop.eup %1526  ;;  %v1766_v58 = vpack.c.bf16 %v236_v50, %v233_v45  ;;  %v1769_v60 = vsel %vm37_vm0, %v167_v6, 0  ;;  %v153_v3 = vmul.f32 64.0, %v1525_v54  ;;  %1534 = vrsqrt.f32 %v124_v8 }
  0xad   :  { %v1774_v63 = vsel %vm37_vm0, %v166_v55, 0  ;;  %v152_v4 = vmul.f32 64.0, %v1527_v56  ;;  %1536 = vrsqrt.f32 %v127_v59  ;;  %v248_v11 = vand.u32 4294901760, %v1769_v60 }
  0xae   :  { %1305 = vmatprep.subr.bf16.mxu1 %v1766_v58  ;;  %1401 = vmatprep.subr.bf16.mxu0 %v1766_v58  ;;  %v113_v61 = vpop.xlane.xlu1 %112  ;;  %v110_v62 = vpop.xlane.xlu0 %109  ;;  %v245_v12 = vand.u32 4294901760, %v1774_v63  ;;  %1538 = vrsqrt.f32 %v126_v9  ;;  %v169_v15 = vmul.f32 %v153_v3, %v1639_v16 }
  0xaf   :  { %1307 = vmatpush3.bf16.xpose.msra.mxu1 %v1766_v58  ;;  %1403 = vmatpush3.bf16.xpose.msra.mxu0 %v1766_v58  ;;  %v129_v5 = vmax.f32 %v113_v61, 1e-24  ;;  %v128_v7 = vmax.f32 %v110_v62, 1e-24  ;;  %v1529_v10 = vpop.eup %1528  ;;  %v168_v18 = vmul.f32 %v152_v4, %v1644_v17 }
  0xb0   :  { %1309 = vmatprep.subr.bf16.mxu1 %v1760_v57  ;;  %1405 = vmatprep.subr.bf16.mxu0 %v1760_v57  ;;  %v1531_v14 = vpop.eup %1530  ;;  %v1788_v20 = vpack.c.bf16 %v248_v11, %v245_v12  ;;  %v155_v21 = vmul.f32 64.0, %v1529_v10  ;;  %v1791_v24 = vsel %vm37_vm0, %v169_v15, 0 }
  0xb1   :  { %1540 = vrsqrt.f32 %v129_v5  ;;  %v1794_v25 = vsel %vm37_vm0, %v168_v18, 0  ;;  %v154_v16 = vmul.f32 64.0, %v1531_v14  ;;  %v254_v27 = vand.u32 4294901760, %v1791_v24 }
  0xb2   :  { %v40_v13 = vpop.xlane.xlu0 %39  ;;  %1542 = vrsqrt.f32 %v128_v7  ;;  %v251_v31 = vand.u32 4294901760, %v1794_v25  ;;  %v171_v32 = vmul.f32 %v155_v21, %v1655_v22  ;;  %v43_v55 = vpop.xlane.xlu1 %42 }
  0xb3   :  { %v44_v19 = vmax.f32 %v40_v13, 1e-24  ;;  %v1533_v17 = vpop.eup %1532  ;;  %v170_v0 = vmul.f32 %v154_v16, %v1660_v23  ;;  %v45_v5 = vmax.f32 %v43_v55, 1e-24 }
  0xb4   :  { %v1808_v38 = vpack.c.bf16 %v254_v27, %v251_v31  ;;  %v212_v44 = vsel %vm37_vm0, %v171_v32, 0  ;;  %v157_v51 = vmul.f32 64.0, %v1533_v17  ;;  %v1851_v17 = vsub.f32 %v1737_v30, %v239_v1 }
  0xb5   :  { %1544 = vrsqrt.f32 %v44_v19  ;;  %v209_v6 = vsel %vm37_vm0, %v170_v0, 0  ;;  %v260_v23 = vand.u32 4294901760, %v212_v44  ;;  %v1861_v0 = vsub.f32 %v1746_v43, %v242_v2 }
  0xb6   :  { %v1535_v26 = vpop.eup %1534  ;;  %v257_v56 = vand.u32 4294901760, %v209_v6  ;;  %v173_v61 = vmul.f32 %v157_v51, %v1671_v28  ;;  %1546 = vrsqrt.f32 %v45_v5  ;;  %v1881_v43 = vsub.f32 %v1794_v25, %v251_v31 }
  0xb7   :  { %1311 = vmatpush3.bf16.xpose.msra.mxu1 %v1760_v57  ;;  %1407 = vmatpush3.bf16.xpose.msra.mxu0 %v1760_v57  ;;  %v1537_v36 = vpop.eup %1536  ;;  %v156_v52 = vmul.f32 64.0, %v1535_v26  ;;  %v1908_v31 = vpack.c.bf16 %v1861_v0, %v1851_v17  ;;  %v350_v5 = vand.u32 4294901760, %v1851_v17 }
  0xb8   :  { %1313 = vmatprep.subr.bf16.mxu1 %v1788_v20  ;;  %1409 = vmatprep.subr.bf16.mxu0 %v1788_v20  ;;  %v1539_v37 = vpop.eup %1538  ;;  %v159_v53 = vmul.f32 64.0, %v1537_v36  ;;  %v1822_v4 = vpack.c.bf16 %v260_v23, %v257_v56  ;;  %v218_v28 = vsel %vm37_vm0, %v173_v61, 0 }
  0xb9   :  { %v158_v54 = vmul.f32 64.0, %v1539_v37  ;;  %v172_v62 = vmul.f32 %v156_v52, %v1676_v29  ;;  %v266_v18 = vand.u32 4294901760, %v218_v28  ;;  %v1866_v37 = vsub.f32 %v1769_v60, %v248_v11 }
  0xba   :  { %v1886_v60 = vsub.f32 %v212_v44, %v260_v23  ;;  %v1888_v11 = vsub.f32 %v209_v6, %v257_v56 }
  0xbb   :  { %v1541_v39 = vpop.eup %1540  ;;  %v174_v7 = vmul.f32 %v158_v54, %v1692_v35  ;;  %v215_v29 = vsel %vm37_vm0, %v172_v62, 0 }
  0xbc   :  { %v1543_v42 = vpop.eup %1542  ;;  %v161_v8 = vmul.f32 64.0, %v1541_v39  ;;  %v263_v19 = vand.u32 4294901760, %v215_v29  ;;  %v1890_v39 = vsub.f32 %v218_v28, %v266_v18  ;;  %v1920_v6 = vpack.c.bf16 %v1886_v60, %v1888_v11 }
  0xbd   :  { %v160_v59 = vmul.f32 64.0, %v1543_v42 }
  0xbe   :  { %v177_v13 = vmul.f32 %v161_v8, %v1703_v40  ;;  %v221_v40 = vsel %vm37_vm0, %v174_v7, 0  ;;  %v1856_v26 = vpack.c.bf16 %v266_v18, %v263_v19 }
  0xbf   :  { %v1545_v49 = vpop.eup %1544  ;;  %1315 = vmatpush3.bf16.xpose.msra.mxu1 %v1788_v20  ;;  %1411 = vmatpush3.bf16.xpose.msra.mxu0 %v1788_v20  ;;  %v176_v14 = vmul.f32 %v160_v59, %v1708_v41  ;;  %v269_v36 = vand.u32 4294901760, %v221_v40 }
  0xc0   :  { %1317 = vmatprep.subr.bf16.mxu1 %v1808_v38  ;;  %1413 = vmatprep.subr.bf16.mxu0 %v1808_v38  ;;  %v48_v22 = vmul.f32 %v1545_v49, %v1719_v46  ;;  %v175_v46 = vmul.f32 %v159_v53, %v1687_v34  ;;  %v1841_v34 = vsub.f32 %v1750_v48, %v236_v50  ;;  %v230_v21 = vsel %vm37_vm0, %v177_v13, 0  ;;  %v1547_v44 = vpop.eup %1546 }
  0xc1   :  { %v227_v16 = vsel %vm37_vm0, %v176_v14, 0  ;;  %v335_v50 = vsub.f32 %v1740_v33, %v233_v45  ;;  %v278_v30 = vand.u32 4294901760, %v230_v21  ;;  %v1871_v33 = vsub.f32 %v1774_v63, %v245_v12 }
  0xc2   :  { %v179_v9 = vsel %vm37_vm0, %v48_v22, 0  ;;  %v224_v35 = vsel %vm37_vm0, %v175_v46, 0  ;;  %v275_v1 = vand.u32 4294901760, %v227_v16  ;;  %v1876_v45 = vsub.f32 %v1791_v24, %v254_v27 }
  0xc3   :  { %v1820_v3 = vand.u32 4294901760, %v179_v9  ;;  %v272_v32 = vand.u32 4294901760, %v224_v35  ;;  %v1884_v2 = vpack.c.bf16 %v1841_v34, %v335_v50  ;;  %v1894_v63 = vsub.f32 %v215_v29, %v263_v19 }
  0xc4   :  { %v1898_v24 = vsub.f32 %v221_v40, %v269_v36  ;;  %v1902_v25 = vsub.f32 %v230_v21, %v278_v30  ;;  %v1904_v27 = vsub.f32 %v227_v16, %v275_v1  ;;  %v1912_v42 = vpack.c.bf16 %v1866_v37, %v1871_v33 }
  0xc5   :  { %v1827_v10 = vsub.f32 %v179_v9, %v1820_v3  ;;  %v1896_v12 = vsub.f32 %v224_v35, %v272_v32  ;;  %v1916_v49 = vpack.c.bf16 %v1876_v45, %v1881_v43  ;;  %v1924_v51 = vpack.c.bf16 %v1890_v39, %v1894_v63 }
  0xc6   :  { %v1932_v22 = vpack.c.bf16 %v1902_v25, %v1904_v27  ;;  %v1934_v23 = vpack.c.bf16 %v272_v32, %v269_v36  ;;  %v49_v53 = vmul.f32 %v1547_v44, %v1724_v47  ;;  %v343_v55 = vand.u32 4294901760, %v1841_v34 }
  0xc7   :  { %1319 = vmatpush3.bf16.xpose.msra.mxu1 %v1808_v38  ;;  %1415 = vmatpush3.bf16.xpose.msra.mxu0 %v1808_v38  ;;  %v315_v15 = vand.u32 4294901760, %v1827_v10  ;;  %v1928_v52 = vpack.c.bf16 %v1896_v12, %v1898_v24  ;;  %v1943_v56 = vpack.c.bf16 %v278_v30, %v275_v1  ;;  %v336_v8 = vand.u32 4294901760, %v335_v50 }
  0xc8   :  { %1321 = vmatprep.subr.bf16.mxu1 %v1822_v4  ;;  %1417 = vmatprep.subr.bf16.mxu0 %v1822_v4  ;;  %v182_v54 = vsel %vm37_vm0, %v49_v53, 0  ;;  %v344_v9 = vsub.f32 %v1841_v34, %v343_v55  ;;  %v357_v46 = vand.u32 4294901760, %v1861_v0  ;;  %v351_v29 = vsub.f32 %v1851_v17, %v350_v5 }
  0xc9   :  { %1231 = vmatprep.mubr.f32.mxu0 %v315_v15  ;;  %v316_v41 = vsub.f32 %v1827_v10, %v315_v15  ;;  %v1945_v59 = vand.u32 4294901760, %v182_v54  ;;  %v337_v47 = vsub.f32 %v335_v50, %v336_v8  ;;  %v1432_v28 = vpack.c.bf16 %v343_v55, %v336_v8 }
  0xca   :  { %v345_v62 = vand.u32 4294901760, %v344_v9  ;;  %v358_v15 = vsub.f32 %v1861_v0, %v357_v46  ;;  %v364_v35 = vand.u32 4294901760, %v1871_v33  ;;  %v371_v40 = vand.u32 4294901760, %v1866_v37 }
  0xcb   :  { %v317_v48 = vand.u32 4294901760, %v316_v41  ;;  %v1953_v61 = vsub.f32 %v182_v54, %v1945_v59  ;;  %v338_v7 = vand.u32 4294901760, %v337_v47  ;;  %v352_v41 = vand.u32 4294901760, %v351_v29 }
  0xcc   :  { %v359_v18 = vand.u32 4294901760, %v358_v15  ;;  %v365_v21 = vsub.f32 %v1871_v33, %v364_v35  ;;  %v372_v16 = vsub.f32 %v1866_v37, %v371_v40  ;;  %v378_v36 = vand.u32 4294901760, %v1881_v43 }
  0xcd   :  { %1126 = vmatprep.mubr.f32.mxu1 %v317_v48  ;;  %v325_v13 = vand.u32 4294901760, %v1953_v61  ;;  %v1336_v14 = vpack.c.bf16 %v345_v62, %v338_v7  ;;  %v1436_v48 = vpack.c.bf16 %v357_v46, %v350_v5  ;;  %v385_v0 = vand.u32 4294901760, %v1876_v45 }
  0xce   :  { %v1340_v17 = vpack.c.bf16 %v359_v18, %v352_v41  ;;  %v366_v50 = vand.u32 4294901760, %v365_v21  ;;  %v373_v32 = vand.u32 4294901760, %v372_v16  ;;  %v379_v1 = vsub.f32 %v1881_v43, %v378_v36 }
  0xcf   :  { %1323 = vmatpush3.bf16.xpose.msra.mxu1 %v1822_v4  ;;  %1419 = vmatpush3.bf16.xpose.msra.mxu0 %v1822_v4  ;;  %v326_v34 = vsub.f32 %v1953_v61, %v325_v13  ;;  %v386_v37 = vsub.f32 %v1876_v45, %v385_v0  ;;  %v1440_v33 = vpack.c.bf16 %v371_v40, %v364_v35  ;;  %v392_v54 = vand.u32 4294901760, %v1888_v11 }
  0xd0   :  { %1325 = vmatprep.subr.bf16.mxu1 %v1856_v26  ;;  %1421 = vmatprep.subr.bf16.mxu0 %v1856_v26  ;;  %v1344_v30 = vpack.c.bf16 %v373_v32, %v366_v50  ;;  %v380_v44 = vand.u32 4294901760, %v379_v1  ;;  %v399_v55 = vand.u32 4294901760, %v1886_v60  ;;  %v1444_v43 = vpack.c.bf16 %v385_v0, %v378_v36 }
  0xd1   :  { %v327_v19 = vand.u32 4294901760, %v326_v34  ;;  %v387_v53 = vand.u32 4294901760, %v386_v37  ;;  %v393_v9 = vsub.f32 %v1888_v11, %v392_v54  ;;  %v406_v5 = vand.u32 4294901760, %v1894_v63 }
  0xd2   :  { %v400_v47 = vsub.f32 %v1886_v60, %v399_v55  ;;  %v413_v46 = vand.u32 4294901760, %v1890_v39  ;;  %v1448_v11 = vpack.c.bf16 %v399_v55, %v392_v54  ;;  %v420_v29 = vand.u32 4294901760, %v1898_v24 }
  0xd3   :  { %v1348_v8 = vpack.c.bf16 %v387_v53, %v380_v44  ;;  %v394_v45 = vand.u32 4294901760, %v393_v9  ;;  %v427_v15 = vand.u32 4294901760, %v1896_v12  ;;  %v434_v18 = vand.u32 4294901760, %v1904_v27 }
  0xd4   :  { %v401_v62 = vand.u32 4294901760, %v400_v47  ;;  %v421_v35 = vsub.f32 %v1898_v24, %v420_v29 }
  0xd5   :  { %v428_v40 = vsub.f32 %v1896_v12, %v427_v15  ;;  %v435_v16 = vsub.f32 %v1904_v27, %v434_v18  ;;  %v1456_v24 = vpack.c.bf16 %v427_v15, %v420_v29 }
  0xd6   :  { %v1352_v7 = vpack.c.bf16 %v401_v62, %v394_v45 }
  0xd7   :  { %1327 = vmatpush3.bf16.xpose.msra.mxu1 %v1856_v26  ;;  %1423 = vmatpush3.bf16.xpose.msra.mxu0 %v1856_v26  ;;  %v429_v41 = vand.u32 4294901760, %v428_v40  ;;  %v436_v12 = vand.u32 4294901760, %v435_v16 }
  0xd8   :  { %1329 = vmatprep.subr.bf16.mxu1 %v1934_v23  ;;  %1425 = vmatprep.subr.bf16.mxu0 %v1934_v23 }
  0xdf   :  { %1331 = vmatpush3.bf16.xpose.msra.mxu1 %v1934_v23  ;;  %1427 = vmatpush3.bf16.xpose.msra.mxu0 %v1934_v23 }
  0xe0   :  { %1333 = vmatprep.subr.bf16.mxu1 %v1943_v56  ;;  %1429 = vmatprep.subr.bf16.mxu0 %v1943_v56 }
  0xe7   :  { %1335 = vmatpush3.bf16.xpose.msra.mxu1 %v1943_v56  ;;  %1431 = vmatpush3.bf16.xpose.msra.mxu0 %v1943_v56 }
  0xe8   :  { %1337 = vmatprep.subr.bf16.mxu1 %v1336_v14  ;;  %1433 = vmatprep.subr.bf16.mxu0 %v1432_v28 }
  0xee   :  { %1127 = vmatmul.mubr.f32.vlgmr.msra.gmra.mrb[0].mxu1 %v327_v19  ;;  %1232 = vmatmul.mubr.f32.vlgmr.msra.gmra.mrb[0].mxu0 %v325_v13  ;;  %v407_v13 = vsub.f32 %v1894_v63, %v406_v5  ;;  %v1452_v63 = vpack.c.bf16 %v413_v46, %v406_v5  ;;  %v441_v19 = vand.u32 4294901760, %v1902_v25 }
  0xef   :  { %1339 = vmatpush3.bf16.xpose.msra.mxu1 %v1336_v14  ;;  %1161 = vmatprep.mubr.f32.mxu1 %v1820_v3  ;;  %v414_v14 = vsub.f32 %v1890_v39, %v413_v46  ;;  %v422_v39 = vand.u32 4294901760, %v421_v35 }
  0xf0   :  { %1435 = vmatpush3.bf16.xpose.msra.mxu0 %v1432_v28  ;;  %1266 = vmatprep.mubr.f32.mxu0 %v1820_v3  ;;  %v408_v60 = vand.u32 4294901760, %v407_v13  ;;  %v1460_v32 = vpack.c.bf16 %v441_v19, %v434_v18 }
  0xf1   :  { %1341 = vmatprep.subr.bf16.mxu1 %v1340_v17  ;;  %1437 = vmatprep.subr.bf16.mxu0 %v1436_v48  ;;  %v415_v28 = vand.u32 4294901760, %v414_v14  ;;  %v1360_v21 = vpack.c.bf16 %v429_v41, %v422_v39 }
  0xf3   :  { %v1356_v34 = vpack.c.bf16 %v415_v28, %v408_v60 }
  0xf7   :  { %1343 = vmatpush3.bf16.xpose.msra.mxu1 %v1340_v17  ;;  %v442_v17 = vsub.f32 %v1902_v25, %v441_v19 }
  0xf8   :  { %1439 = vmatpush3.bf16.xpose.msra.mxu0 %v1436_v48  ;;  %1345 = vmatprep.subr.bf16.mxu1 %v1344_v30 }
  0xf9   :  { %1441 = vmatprep.subr.bf16.mxu0 %v1440_v33  ;;  %v443_v48 = vand.u32 4294901760, %v442_v17 }
  0xfb   :  { %v1364_v50 = vpack.c.bf16 %v443_v48, %v436_v12 }
  0xff   :  { %1347 = vmatpush3.bf16.xpose.msra.mxu1 %v1344_v30 }
 0x100   :  { %1443 = vmatpush3.bf16.xpose.msra.mxu0 %v1440_v33  ;;  %1349 = vmatprep.subr.bf16.mxu1 %v1348_v8 }
 0x101   :  { %1445 = vmatprep.subr.bf16.mxu0 %v1444_v43 }
 0x107   :  { %1351 = vmatpush3.bf16.xpose.msra.mxu1 %v1348_v8 }
 0x108   :  { %1447 = vmatpush3.bf16.xpose.msra.mxu0 %v1444_v43  ;;  %1353 = vmatprep.subr.bf16.mxu1 %v1352_v7 }
 0x109   :  { %1449 = vmatprep.subr.bf16.mxu0 %v1448_v11 }
 0x10f   :  { %1355 = vmatpush3.bf16.xpose.msra.mxu1 %v1352_v7 }
 0x110   :  { %1451 = vmatpush3.bf16.xpose.msra.mxu0 %v1448_v11  ;;  %1357 = vmatprep.subr.bf16.mxu1 %v1356_v34 }
 0x111   :  { %1453 = vmatprep.subr.bf16.mxu0 %v1452_v63 }
 0x117   :  { %1359 = vmatpush3.bf16.xpose.msra.mxu1 %v1356_v34 }
 0x118   :  { %1455 = vmatpush3.bf16.xpose.msra.mxu0 %v1452_v63  ;;  %1361 = vmatprep.subr.bf16.mxu1 %v1360_v21 }
 0x119   :  { %1457 = vmatprep.subr.bf16.mxu0 %v1456_v24 }
 0x11f   :  { %1363 = vmatpush3.bf16.xpose.msra.mxu1 %v1360_v21 }
 0x120   :  { %1459 = vmatpush3.bf16.xpose.msra.mxu0 %v1456_v24  ;;  %1365 = vmatprep.subr.bf16.mxu1 %v1364_v50 }
 0x121   :  { %1461 = vmatprep.subr.bf16.mxu0 %v1460_v32 }
 0x127   :  { %1367 = vmatpush3.bf16.xpose.msra.mxu1 %v1364_v50 }
 0x128   :  { %1463 = vmatpush3.bf16.xpose.msra.mxu0 %v1460_v32  ;;  %1369 = vmatprep.subr.bf16.mxu1 %v1884_v2 }
 0x129   :  { %1465 = vmatprep.subr.bf16.mxu0 %v1766_v58 }
 0x12e   :  { %1162 = vmatmul.mubr.f32.vlgmr.msra.gmra.mrb[0].mxu1 %v1945_v59 }
 0x12f   :  { %1267 = vmatmul.mubr.f32.vlgmr.msra.gmra.mrb[0].mxu0 %v1945_v59  ;;  %1371 = vmatpush3.bf16.xpose.msra.mxu1 %v1884_v2 }
 0x130   :  { %1196 = vmatprep.mubr.f32.mxu1 %v1827_v10  ;;  %1467 = vmatpush3.bf16.xpose.msra.mxu0 %v1766_v58  ;;  %v916_v58 = vlaneseq }
 0x131   :  { %1301 = vmatprep.mubr.f32.mxu0 %v1820_v3  ;;  %1373 = vmatprep.subr.bf16.mxu1 %v1908_v31 }
 0x132   :  { %1469 = vmatprep.subr.bf16.mxu0 %v1760_v57 }
 0x137   :  { %1375 = vmatpush3.bf16.xpose.msra.mxu1 %v1908_v31  ;;  %v34_v31 = vld [vmem:[%s2047_s2 + $0x8] sm:$0xff] }
 0x138   :  { %1471 = vmatpush3.bf16.xpose.msra.mxu0 %v1760_v57  ;;  %1377 = vmatprep.subr.bf16.mxu1 %v1912_v42  ;;  %v1568_v57 = vmov 0  }
 0x139   :  { %1473 = vmatprep.subr.bf16.mxu0 %v1788_v20  ;;  %1511 = vset.pattern.permute.xlu1 %v1568_v57 }
 0x13a   :  { %1510 = vset.pattern.permute.xlu0 %v1568_v57 }
 0x13f   :  { %1379 = vmatpush3.bf16.xpose.msra.mxu1 %v1912_v42  ;;  %v33_v42 = vld [vmem:[%s2047_s2] sm:$0xff] }
 0x140   :  { %1475 = vmatpush3.bf16.xpose.msra.mxu0 %v1788_v20  ;;  %1381 = vmatprep.subr.bf16.mxu1 %v1916_v49  ;;  %v917_v20 = vand.u32 127, %v916_v58 }
 0x141   :  { %1477 = vmatprep.subr.bf16.mxu0 %v1808_v38 }
 0x142   :  { %vm918_vm1 = vcmp.lt.s32.totalorder %v917_v20, 8 }
 0x147   :  { %1383 = vmatpush3.bf16.xpose.msra.mxu1 %v1916_v49 }
 0x148   :  { %1479 = vmatpush3.bf16.xpose.msra.mxu0 %v1808_v38  ;;  %1385 = vmatprep.subr.bf16.mxu1 %v1920_v6 }
 0x149   :  { %1481 = vmatprep.subr.bf16.mxu0 %v1822_v4 }
 0x14f   :  { %1387 = vmatpush3.bf16.xpose.msra.mxu1 %v1920_v6 }
 0x150   :  { %1483 = vmatpush3.bf16.xpose.msra.mxu0 %v1822_v4  ;;  %1389 = vmatprep.subr.bf16.mxu1 %v1924_v51 }
 0x151   :  { %1485 = vmatprep.subr.bf16.mxu0 %v1856_v26 }
 0x157   :  { %1391 = vmatpush3.bf16.xpose.msra.mxu1 %v1924_v51 }
 0x158   :  { %1487 = vmatpush3.bf16.xpose.msra.mxu0 %v1856_v26  ;;  %1393 = vmatprep.subr.bf16.mxu1 %v1928_v52 }
 0x159   :  { %1489 = vmatprep.subr.bf16.mxu0 %v1934_v23 }
 0x15f   :  { %1395 = vmatpush3.bf16.xpose.msra.mxu1 %v1928_v52 }
 0x160   :  { %1491 = vmatpush3.bf16.xpose.msra.mxu0 %v1934_v23  ;;  %1397 = vmatprep.subr.bf16.mxu1 %v1932_v22 }
 0x161   :  { %1493 = vmatprep.subr.bf16.mxu0 %v1943_v56 }
 0x167   :  { %1399 = vmatpush3.bf16.xpose.msra.mxu1 %v1932_v22 }
 0x168   :  { %1495 = vmatpush3.bf16.xpose.msra.mxu0 %v1943_v56 }
 0x16e   :  { %1197 = vmatmul.mubr.f32.vlgmr.msra.gmra.mrb[0].mxu1 %v1953_v61 }
 0x16f   :  { %1302 = vmatmul.mubr.f32.vlgmr.msra.gmra.mrb[0].mxu0 %v1945_v59 }
 0x241   :  { %v1198_v38 = vpop.f32.mrb[0].mxu1 }
 0x242   :  { %v1303_v3 = vpop.f32.mrb[0].mxu0  ;;  %v590_v4 = vpop.f32.mrb[1].mxu1 }
 0x243   :  { %v1496_v10 = vadd.f32 %v1303_v3, %v1198_v38  ;;  %v906_v26 = vpop.f32.mrb[1].mxu0 }
 0x244   :  { %v1497_v2 = vadd.f32 %v906_v26, %v590_v4 }
 0x245   :  { %v920_v25 = vsel %vm918_vm1, %v1496_v10, -1e+30 }
 0x246   :  { %923 = vmax.xlane.f32.xlu1 %v920_v25  ;;  %v919_v27 = vsel %vm918_vm1, %v1497_v2, -1e+30 }
 0x247   :  { %921 = vmax.xlane.f32.xlu0 %v919_v27 }
 0x257   :  { %945 = vperm.xlu1 %1511, %v34_v31  }
 0x25d   :  { %942 = vperm.xlu0 %1510, %v33_v42  }
 0x2d3   :  { %v924_v49 = vpop.xlane.xlu1 %923 }
 0x2d4   :  { %v926_v6 = vsub.f32 %v920_v25, %v924_v49  ;;  %v922_v51 = vpop.xlane.xlu0 %921 }
 0x2d5   :  { %v925_v52 = vsub.f32 %v919_v27, %v922_v51 }
 0x2d6   :  { %v929_v22 = vmul.f32 1.442695, %v926_v6 }
 0x2d7   :  { %v927_v23 = vmul.f32 1.442695, %v925_v52  ;;  %v946_v36 = vpop.permute.xlu1 %945 }
 0x2d8   :  { %1548 = vpow2.f32 %v929_v22  ;;  %vm948_vm3 = vcmp.eq.s32.totalorder %v917_v20, %v946_v36 }
 0x2d9   :  { %1550 = vpow2.f32 %v927_v23  ;;  %v950_v30 = vsel %vm948_vm3, %v920_v25, 0.0 }
 0x2dc   :  { %v943_v56 = vpop.permute.xlu0 %942 }
 0x2dd   :  { %vm947_vm2 = vcmp.eq.s32.totalorder %v917_v20, %v943_v56 }
 0x2de   :  { %v949_v0 = vsel %vm947_vm2, %v919_v27, 0.0 }
 0x2e2   :  { %v1549_v59 = vpop.eup %1548 }
 0x2e3   :  { %v1551_v61 = vpop.eup %1550  ;;  %933 = vadd.xlane.f32.xlu0 %v1549_v59 }
 0x2e4   :  { %931 = vadd.xlane.f32.xlu1 %v1551_v61 }
 0x2e8   :  { %951 = vadd.xlane.f32.xlu1 %v949_v0 }
 0x2ec   :  { %953 = vadd.xlane.f32.xlu1 %v950_v30 }
 0x370   :  { %v934_v1 = vpop.xlane.xlu0 %933 }
 0x371   :  { %1552 = vlog2.f32 %v934_v1  ;;  %v932_v37 = vpop.xlane.xlu1 %931 }
 0x372   :  { %1554 = vlog2.f32 %v932_v37 }
 0x375   :  { %v952_v33 = vpop.xlane.xlu1 %951 }
 0x379   :  { %v954_v47 = vpop.xlane.xlu1 %953 }
 0x37b   :  { %v1553_v44 = vpop.eup %1552 }
 0x37c   :  { %v1555_v53 = vpop.eup %1554  ;;  %v938_v54 = vmul.f32 0.6931472, %v1553_v44 }
 0x37d   :  { %v936_v55 = vmul.f32 0.6931472, %v1555_v53 }
 0x37e   :  { %v940_v8 = vadd.f32 %v938_v54, %v924_v49 }
 0x37f   :  { %v939_v9 = vadd.f32 %v936_v55, %v922_v51 }
 0x380   :  { %v956_v43 = vsub.f32 %v940_v8, %v954_v47 }
 0x381   :  { %v955_v45 = vsub.f32 %v939_v9, %v952_v33 }
 0x382   :  { %v959_v62 = vsel %vm957_vm4, %v956_v43, 0.0 }
 0x383   :  { %v958_v5 = vsel %vm957_vm4, %v955_v45, 0.0 }
 0x384   :  { %v960_v46 = vadd.f32 %v959_v62, %v958_v5 }
 0x386   :  { %961 = vadd.xlane.f32.xlu1 %v960_v46 }
 0x413   :  { %v962_v7 = vpop.xlane.xlu1 %961 }
 0x414   :  { %v963_v13 = vrot.slane %v962_v7, 4 }
 0x416   :  { %v964_v14 = vadd.f32 %v963_v13, %v962_v7 }
 0x418   :  { %v965_v11 = vrot.slane %v964_v14, 2 }
 0x41a   :  { %v966_v60 = vadd.f32 %v965_v11, %v964_v14 }
 0x41c   :  { %v967_v28 = vrot.slane %v966_v60, 1 }
 0x41e   :  { %v968_v29 = vadd.f32 %v967_v28, %v966_v60 }
 0x420   :  { %1506 = vpush %v968_v29 }
 0x451   :  { %s1507_s2 = spop %1506 }
 0x452   :  { %s970_s23 = smul.f32 0.0625, %s1507_s2 }
 0x454   :  { %972 = sst [smem:[#allocation2]] %s970_s23 }
 0x455   :  { %1565 = shalt.err (!%p1562_p2)
}
 0x456   :  { %s1569_s4 = smov [#allocation2]  }
 0x457   :  { %980 = dma.smem_to_hbm %s1569_s4, 16, %s2048_s3, [#allocation3]  }
 0x458   :  { %1566 = dma.done.wait [#allocation3], 16  }
 0x459   :  { %1567 = vsyncadd [#allocation3], 4294967280 }
 0x45a   :  { %984 = sfence }
 0x45b   :  { %985 = vsyncpa [#allocation3], 1 }

</bundles_post_ra>
